<compile_context>
chip_gen: v6e
topology: v6e:2x2x1
jax: 0.10.0
libtpu: 0.0.40
codegen_flags: <defaults>
</compile_context>

<pallas_src>
import jax
import jax.numpy as jnp
from jax import lax
from jax.experimental import pallas as pl
from jax.experimental.pallas import tpu as pltpu

# ----- synthetic model hyperparameters (small) -----
D_MODEL = 32                      # d_model (channels)
D_FF = 32                         # d_ff (== d_model, required by shared BatchNorm1d)
FILTERS = (3, 5, 7)               # odd filter sizes -> 'same' length outputs
NF = len(FILTERS)
B = 2                             # batch
L = 16                            # sequence length
MAX_F = max(FILTERS)              # 7 taps in the unified window
MAX_PAD = (MAX_F - 1) // 2        # 3
LANES = 128                       # single lane-dense N block (3 x 32 filters + 32 zero lanes)
K_COLS = MAX_F * D_MODEL          # im2col contraction dim = 224
BL = B * L                        # matmul M = 32
BN_EPS = 1e-5


def har_cnn_kernel(x_ref, w_ref, scale_ref, shift_ref, o_ref):
    # x_ref     : (BL, K_COLS)   bf16 im2col'd input
    # w_ref     : (K_COLS, 128)  bf16 tap-padded conv weights; filter j in lanes j*32:(j+1)*32,
    #                            lanes 96:128 zero
    # scale_ref : (1, 128)  f32  fused (BN_scale / 3) per lane, zero in pad lanes
    # shift_ref : (1, 128)  f32  fused (conv_bias*BN_scale + BN_shift) / 3, zero in pad lanes
    # o_ref     : (BL, 128) f32  every 32-lane group holds sum_f relu(BN(conv_f))/3
    r = jnp.dot(x_ref[...], w_ref[...], preferred_element_type=jnp.float32)   # one MXU push
    r = jnp.maximum(r * scale_ref[...] + shift_ref[...], 0.0)                 # bias+BN+relu+(/3)
    # Cross-filter reduction on the XLU: summing r with its 32/64/96-lane rotations makes
    # every 32-lane group equal f0+f1+f2 (+ the zero pad block), independent of the roll
    # direction convention.  Rolls use the otherwise-idle XLU slot.
    acc = r + pltpu.roll(r, 32, 1)
    acc = acc + pltpu.roll(r, 64, 1)
    acc = acc + pltpu.roll(r, 96, 1)
    o_ref[...] = acc                                                          # unmasked 128-lane store


@jax.jit
def har_cnn_forward(x, w_all, scale_all, shift_all):
    """x: (B, L, D_MODEL) float32 -> (B, L, D_FF) float32."""
    # Tiny wrapper-side im2col (sanctioned at this size); bf16 cast for the MXU.
    xp = jnp.pad(x, ((0, 0), (MAX_PAD, MAX_PAD), (0, 0)))                        # (B, L+6, C)
    cols = jnp.concatenate([xp[:, m:m + L, :] for m in range(MAX_F)], axis=-1)   # (B, L, 7*C)
    x_cols = cols.reshape(BL, K_COLS).astype(jnp.bfloat16)                       # (32, 224) bf16

    bytes_accessed = 2 * (BL * K_COLS + K_COLS * LANES) + 4 * (2 * LANES + BL * LANES)
    out = pl.pallas_call(
        har_cnn_kernel,
        # grid=() : single invocation; at BL=32 a grid only adds the per-step floor.
        # TODO(synk): if BL grows beyond toy size, add a 1-D M-tile grid with
        # dimension_semantics=("parallel",) so v7x shards rows across both TensorCores.
        out_shape=jax.ShapeDtypeStruct((BL, LANES), jnp.float32),
        in_specs=[
            pl.BlockSpec(memory_space=pltpu.MemorySpace.VMEM),
            pl.BlockSpec(memory_space=pltpu.MemorySpace.VMEM),
            pl.BlockSpec(memory_space=pltpu.MemorySpace.VMEM),
            pl.BlockSpec(memory_space=pltpu.MemorySpace.VMEM),
        ],
        out_specs=pl.BlockSpec(memory_space=pltpu.MemorySpace.VMEM),
        compiler_params=pltpu.CompilerParams(
            # Let XLA fuse the im2col producer into the kernel's x_cols input DMA.
            allow_input_fusion=[True, False, False, False],
        ),
        cost_estimate=pl.CostEstimate(
            flops=2 * BL * K_COLS * LANES,
            transcendentals=0,
            bytes_accessed=bytes_accessed,
        ),
    )(x_cols, w_all, scale_all, shift_all)
    return out[:, :D_FF].reshape(B, L, D_FF)


def pack_params(weights, biases, gamma, beta, rmean, rvar):
    """Fold conv bias + eval-mode BN + /3 into per-lane scale/shift; pack the three
    tap-padded filters into one lane-interleaved (K_COLS, 128) bf16 weight matrix."""
    s = gamma / jnp.sqrt(rvar + BN_EPS)            # BN scale
    t = beta - rmean * s                           # BN shift
    w_blocks, shift_blocks = [], []
    for wf, bf, f in zip(weights, biases, FILTERS):
        pad = (f - 1) // 2
        off = MAX_PAD - pad                        # tap offset inside the 7-wide window
        wt = jnp.transpose(wf, (2, 1, 0))          # (f, C, D_FF)
        wt = jnp.pad(wt, ((off, MAX_F - f - off), (0, 0), (0, 0)))   # (7, C, 32)
        w_blocks.append(wt)
        shift_blocks.append((bf * s + t) / 3.0)    # /3: torch.div(., 3) literal
    w_all = jnp.concatenate(w_blocks, axis=-1)                             # (7, C, 96)
    w_all = jnp.pad(w_all, ((0, 0), (0, 0), (0, LANES - NF * D_FF)))       # (7, C, 128)
    w_all = w_all.reshape(K_COLS, LANES).astype(jnp.bfloat16)              # (224, 128) bf16
    scale_all = jnp.pad(jnp.tile(s / 3.0, NF), (0, LANES - NF * D_FF)).reshape(1, LANES)
    shift_all = jnp.pad(jnp.concatenate(shift_blocks), (0, LANES - NF * D_FF)).reshape(1, LANES)
    return w_all, scale_all.astype(jnp.float32), shift_all.astype(jnp.float32)


def reference_forward(x, weights, biases, gamma, beta, rmean, rvar):
    """Pure-JAX re-statement of the torch forward (eval mode) for validation."""
    xt = jnp.transpose(x, (0, 2, 1))               # (B, C, L) == x.transpose(-1, -2)
    outs = []
    for wf, bf in zip(weights, biases):
        f = wf.shape[-1]
        pad = (f - 1) // 2
        y = lax.conv_general_dilated(
            xt, wf, window_strides=(1,), padding=[(pad, pad)],
            dimension_numbers=("NCH", "OIH", "NCH"))
        y = y + bf[None, :, None]
        y = (y - rmean[None, :, None]) / jnp.sqrt(rvar[None, :, None] + BN_EPS)
        y = y * gamma[None, :, None] + beta[None, :, None]
        outs.append(jnp.maximum(y, 0.0))
    re = sum(outs) / 3.0
    return jnp.transpose(re, (0, 2, 1))            # (B, L, D_FF)


if __name__ == "__main__":
    key = jax.random.PRNGKey(0)
    keys = jax.random.split(key, 12)

    x = jax.random.normal(keys[0], (B, L, D_MODEL), jnp.float32)

    # Deterministic synthetic parameters (shapes follow torch Conv1d / BatchNorm1d).
    weights, biases = [], []
    for i, f in enumerate(FILTERS):
        weights.append(jax.random.normal(keys[1 + i], (D_FF, D_MODEL, f), jnp.float32) * 0.1)
        biases.append(jax.random.normal(keys[4 + i], (D_FF,), jnp.float32) * 0.1)
    gamma = jax.random.uniform(keys[7], (D_FF,), jnp.float32, 0.5, 1.5)   # bn.weight
    beta = jax.random.normal(keys[8], (D_FF,), jnp.float32) * 0.1         # bn.bias
    rmean = jax.random.normal(keys[9], (D_FF,), jnp.float32) * 0.1        # bn.running_mean
    rvar = jax.random.uniform(keys[10], (D_FF,), jnp.float32, 0.5, 1.5)   # bn.running_var

    w_all, scale_all, shift_all = pack_params(weights, biases, gamma, beta, rmean, rvar)

    out = har_cnn_forward(x, w_all, scale_all, shift_all)
    jax.block_until_ready(out)

    ref = reference_forward(x, weights, biases, gamma, beta, rmean, rvar)
    assert out.shape == (B, L, D_FF)
    # bf16 matmul inputs -> relaxed tolerance (epilogue kept in f32 to bound the error).
    assert jnp.allclose(out, ref, atol=3e-2, rtol=3e-2), float(jnp.max(jnp.abs(out - ref)))
    print("KERNEL_OK")
</pallas_src>

<mosaic_0001>
module attributes {stable_mosaic.version = 11 : i64} {
  func.func @har_cnn_kernel(%arg0: memref<32x224xbf16, #tpu.memory_space<vmem>>, %arg1: memref<224x128xbf16, #tpu.memory_space<vmem>>, %arg2: memref<1x128xf32, #tpu.memory_space<vmem>>, %arg3: memref<1x128xf32, #tpu.memory_space<vmem>>, %arg4: memref<32x128xf32, #tpu.memory_space<vmem>>) attributes {dimension_semantics = [], scalar_prefetch = 0 : i64, scratch_operands = 0 : i64, tpu.core_type = #tpu.core_type<tc>} {
    %c0 = arith.constant 0 : index
    %c0_0 = arith.constant 0 : index
    %0 = vector.load %arg0[%c0, %c0_0] : memref<32x224xbf16, #tpu.memory_space<vmem>>, vector<32x224xbf16>
    %c0_1 = arith.constant 0 : index
    %c0_2 = arith.constant 0 : index
    %1 = vector.load %arg1[%c0_1, %c0_2] : memref<224x128xbf16, #tpu.memory_space<vmem>>, vector<224x128xbf16>
    %cst = arith.constant dense<0.000000e+00> : vector<32x128xf32>
    %2 = tpu.matmul %0, %1, %cst {dimension_numbers = #tpu.dot_dimension_numbers<[1], [0], [0], [1], [0, 0, 1, 1], [], []>} : vector<32x224xbf16>, vector<224x128xbf16>, vector<32x128xf32> -> vector<32x128xf32>
    %c0_3 = arith.constant 0 : index
    %c0_4 = arith.constant 0 : index
    %3 = vector.load %arg2[%c0_3, %c0_4] : memref<1x128xf32, #tpu.memory_space<vmem>>, vector<1x128xf32>
    %4 = vector.broadcast %3 : vector<1x128xf32> to vector<32x128xf32>
    %5 = arith.mulf %2, %4 : vector<32x128xf32>
    %c0_5 = arith.constant 0 : index
    %c0_6 = arith.constant 0 : index
    %6 = vector.load %arg3[%c0_5, %c0_6] : memref<1x128xf32, #tpu.memory_space<vmem>>, vector<1x128xf32>
    %7 = vector.broadcast %6 : vector<1x128xf32> to vector<32x128xf32>
    %8 = arith.addf %5, %7 : vector<32x128xf32>
    %cst_7 = arith.constant 0.000000e+00 : f32
    %9 = vector.broadcast %cst_7 : f32 to vector<32x128xf32>
    %10 = arith.maximumf %8, %9 : vector<32x128xf32>
    %c32_i32 = arith.constant 32 : i32
    %11 = tpu.dynamic_rotate %10 by %c32_i32 dim 1 : vector<32x128xf32>, i32 -> vector<32x128xf32>
    %12 = arith.addf %10, %11 : vector<32x128xf32>
    %c64_i32 = arith.constant 64 : i32
    %13 = tpu.dynamic_rotate %10 by %c64_i32 dim 1 : vector<32x128xf32>, i32 -> vector<32x128xf32>
    %14 = arith.addf %12, %13 : vector<32x128xf32>
    %c96_i32 = arith.constant 96 : i32
    %15 = tpu.dynamic_rotate %10 by %c96_i32 dim 1 : vector<32x128xf32>, i32 -> vector<32x128xf32>
    %16 = arith.addf %14, %15 : vector<32x128xf32>
    %c0_8 = arith.constant 0 : index
    %c0_9 = arith.constant 0 : index
    %17 = vector.load %arg4[%c0_8, %c0_9] : memref<32x128xf32, #tpu.memory_space<vmem>>, vector<32x128xf32>
    tpu.vector_store %arg4[%c0_8, %c0_9], %16 {strides = array<i32>} : memref<32x128xf32, #tpu.memory_space<vmem>>, vector<32x128xf32>,
    return
  }
}

</mosaic_0001>

<bundles_post_ra>
// kernel: har_cnn_forward.1
= control target key start
LH: loop header
LB: loop body
LE: loop exit
PB: predicated region body
PF: predicated region fallthrough
CT: control target
= control target key end

     0   :  { %v390_v1 = vmov 0   ;;  %vm153_vm0 = vcmask 785408   ;;  %s513_s0 = inlined_call_operand.vmem [shape: bf16[32,224], index: 0, kind: input, shape index: {}]   ;;  %s514_s1 = inlined_call_operand.vmem [shape: bf16[224,128], index: 1, kind: input, shape index: {}]   ;;  %s515_s2 = inlined_call_operand.vmem [shape: f32[1,128], index: 2, kind: input, shape index: {}]   ;;  %s516_s3 = inlined_call_operand.vmem [shape: f32[1,128], index: 3, kind: input, shape index: {}]   ;;  %s517_s4 = inlined_call_operand.hbm [shape: f32[32,128], index: 4, kind: output, shape index: {}]  }
   0x1   :  { %v348_v0 = vld [vmem:[%s514_s1 + $0x38] sm:$0xff]   ;;  %160 = vmatprep.subr.bf16.mxu0 %v390_v1  ;;  %313 = vmatprep.subr.bf16.mxu1 %v390_v1  ;;  %v349_v2 = vld [vmem:[%s514_s1 + $0x30] sm:$0xff]   ;;  %v350_v3 = vld [vmem:[%s514_s1 + $0x28] sm:$0xff]  }
   0x2   :  { %161 = vmatpush1.bf16.msra.mxu0 %v348_v0  ;;  %327 = vmatpush1.bf16.msra.mxu1 %v348_v0  ;;  %v351_v4 = vld [vmem:[%s514_s1 + $0x20] sm:$0xff]   ;;  %v352_v5 = vld [vmem:[%s514_s1 + $0x18] sm:$0xff]  }
   0x3   :  { %162 = vmatprep.subr.bf16.mxu0 %v390_v1  ;;  %314 = vmatprep.subr.bf16.mxu1 %v390_v1  ;;  %v364_v6 = vld [vmem:[%s513_s0 + $0x4] ss:$8 sps:$4 sm:$0xff]   ;;  %v367_v7 = vld [vmem:[%s513_s0 + $0x14] ss:$8 sps:$4 sm:$0xff]  }
   0x6   :  { %163 = vmatpush1.bf16.msra.mxu0 %v349_v2  ;;  %328 = vmatpush1.bf16.msra.mxu1 %v349_v2 }
   0x7   :  { %164 = vmatprep.subr.bf16.mxu0 %v390_v1  ;;  %315 = vmatprep.subr.bf16.mxu1 %v390_v1 }
   0xa   :  { %165 = vmatpush1.bf16.msra.mxu0 %v350_v3  ;;  %329 = vmatpush1.bf16.msra.mxu1 %v350_v3 }
   0xb   :  { %166 = vmatprep.subr.bf16.mxu0 %v390_v1  ;;  %316 = vmatprep.subr.bf16.mxu1 %v390_v1 }
   0xe   :  { %167 = vmatpush1.bf16.msra.mxu0 %v351_v4  ;;  %330 = vmatpush1.bf16.msra.mxu1 %v351_v4 }
   0xf   :  { %168 = vmatprep.subr.bf16.mxu0 %v390_v1  ;;  %317 = vmatprep.subr.bf16.mxu1 %v390_v1 }
  0x10   :  { %9 = vsyncpa [#allocation3], 0  ;;  %309 = vmatprep.mubr.msk.bf16.mxu0 %vm153_vm0, %v364_v6  ;;  %v353_v8 = vld [vmem:[%s514_s1 + $0x10] sm:$0xff]   ;;  %310 = vmatprep.mubr.msk.bf16.mxu1 %vm153_vm0, %v367_v7  ;;  %v354_v9 = vld [vmem:[%s514_s1 + $0x8] sm:$0xff]   ;;  %s394_s28 = smov [#allocation2]  }
  0x11   :  { %v355_v10 = vld [vmem:[%s514_s1] sm:$0xff]   ;;  %v356_v11 = vld [vmem:[%s514_s1 + $0x68] sm:$0xff]   ;;  %v358_v13 = vld [vmem:[%s514_s1 + $0x58] sm:$0xff]   ;;  %s280_s29 = sshll.u32 %s394_s28, 4  ;;  %s281_s29 = int_to_ptr.vmem [resolvable:$true] %s280_s29 }
  0x12   :  { %169 = vmatpush1.bf16.msra.mxu0 %v352_v5  ;;  %331 = vmatpush1.bf16.msra.mxu1 %v352_v5  ;;  %v357_v12 = vld [vmem:[%s514_s1 + $0x60] sm:$0xff]   ;;  %v359_v14 = vld [vmem:[%s514_s1 + $0x50] sm:$0xff]   ;;  %v360_v15 = vld [vmem:[%s514_s1 + $0x48] sm:$0xff]   ;;  %s368_s30 = scalar_lea.vmem %s281_s29, 512  ;;  %p373_p1 = scmp.lt.s32.totalorder %s281_s29, %s281_s29 }
  0x13   :  { %170 = vmatprep.subr.bf16.mxu0 %v390_v1  ;;  %318 = vmatprep.subr.bf16.mxu1 %v390_v1  ;;  %v361_v16 = vld [vmem:[%s514_s1 + $0x40] sm:$0xff]   ;;  %v365_v18 = vld [vmem:[%s513_s0 + $0x10] ss:$8 sps:$4 sm:$0xff]   ;;  %p369_p0 = scmp.ne.s32.totalorder %s281_s29, %s368_s30  ;;  %p374_p2 = scmp.lt.s32.totalorder %s368_s30, %s368_s30 }
  0x14   :  { %v362_v17 = vld [vmem:[%s513_s0] ss:$8 sps:$4 sm:$0xff]   ;;  %s391_s0 = smov 32  }
  0x15   :  { %v311_v19 = vld [vmem:[%s515_s2] ss:$0 sm:$0xff]  ;;  %s392_s2 = smov 64   ;;  %p375_p3 = por %p374_p2, %p373_p1 }
  0x16   :  { %171 = vmatpush1.bf16.msra.mxu0 %v353_v8  ;;  %332 = vmatpush1.bf16.msra.mxu1 %v353_v8  ;;  %v312_v21 = vld [vmem:[%s516_s3] ss:$0 sm:$0xff]  ;;  %s393_s3 = smov 96  }
  0x17   :  { %172 = vmatprep.subr.bf16.mxu0 %v390_v1  ;;  %319 = vmatprep.subr.bf16.mxu1 %v390_v1  ;;  %p376_p4 = pnand %p375_p3, %p369_p0 }
  0x1a   :  { %173 = vmatpush1.bf16.msra.mxu0 %v354_v9  ;;  %333 = vmatpush1.bf16.msra.mxu1 %v354_v9 }
  0x1b   :  { %174 = vmatprep.subr.bf16.mxu0 %v390_v1  ;;  %320 = vmatprep.subr.bf16.mxu1 %v390_v1 }
  0x1e   :  { %175 = vmatpush1.bf16.msra.mxu0 %v355_v10  ;;  %334 = vmatpush1.bf16.msra.mxu1 %v355_v10 }
  0x1f   :  { %180 = vmatprep.subr.bf16.mxu0 %v390_v1  ;;  %321 = vmatprep.subr.bf16.mxu1 %v390_v1 }
  0x22   :  { %181 = vmatpush2.bf16.msra.mxu0 %v356_v11  ;;  %335 = vmatpush2.bf16.msra.mxu1 %v356_v11 }
  0x23   :  { %182 = vmatprep.subr.bf16.mxu0 %v390_v1  ;;  %322 = vmatprep.subr.bf16.mxu1 %v390_v1 }
  0x26   :  { %183 = vmatpush2.bf16.msra.mxu0 %v357_v12  ;;  %336 = vmatpush2.bf16.msra.mxu1 %v357_v12 }
  0x27   :  { %184 = vmatprep.subr.bf16.mxu0 %v390_v1  ;;  %323 = vmatprep.subr.bf16.mxu1 %v390_v1 }
  0x2a   :  { %185 = vmatpush2.bf16.msra.mxu0 %v358_v13  ;;  %337 = vmatpush2.bf16.msra.mxu1 %v358_v13 }
  0x2b   :  { %186 = vmatprep.subr.bf16.mxu0 %v390_v1  ;;  %324 = vmatprep.subr.bf16.mxu1 %v390_v1 }
  0x2e   :  { %187 = vmatpush2.bf16.msra.mxu0 %v359_v14  ;;  %338 = vmatpush2.bf16.msra.mxu1 %v359_v14 }
  0x2f   :  { %188 = vmatprep.subr.bf16.mxu0 %v390_v1  ;;  %325 = vmatprep.subr.bf16.mxu1 %v390_v1 }
  0x32   :  { %189 = vmatpush2.bf16.msra.mxu0 %v360_v15  ;;  %339 = vmatpush2.bf16.msra.mxu1 %v360_v15 }
  0x33   :  { %190 = vmatprep.subr.bf16.mxu0 %v390_v1  ;;  %326 = vmatprep.subr.bf16.mxu1 %v390_v1 }
  0x36   :  { %191 = vmatpush2.bf16.msra.mxu0 %v361_v16  ;;  %340 = vmatpush2.bf16.msra.mxu1 %v361_v16 }
  0x39   :  { %193 = vmatmul.mubr.bf16.vlgmr.msra.gmra.mxu0 %v362_v17  ;;  %201 = vmatmul.mubr.bf16.vlgmr.msra.gmra.mxu1 %v365_v18 }
  0xf9   :  { %v194_v20 = vpop.f32.mrf.mxu0  ;;  %v202_v22 = vpop.f32.mrf.mxu1 }
  0xfa   :  { %v216_v23 = vmul.f32 %v311_v19, %v194_v20  ;;  %v218_v24 = vmul.f32 %v311_v19, %v202_v22 }
  0xfb   :  { %v196_v25 = vpop.f32.mrf.mxu0  ;;  %v204_v26 = vpop.f32.mrf.mxu1 }
  0xfc   :  { %v227_v27 = vadd.f32 %v312_v21, %v216_v23  ;;  %v229_v28 = vadd.f32 %v312_v21, %v218_v24 }
  0xfd   :  { %v197_v29 = vpop.f32.mrf.mxu0  ;;  %v205_v30 = vpop.f32.mrf.mxu1 }
  0xfe   :  { %v231_v31 = vmax.f32 %v227_v27, 0.0  ;;  %v233_v32 = vmax.f32 %v229_v28, 0.0  ;;  %v217_v33 = vmul.f32 %v311_v19, %v197_v29  ;;  %v219_v34 = vmul.f32 %v311_v19, %v205_v30 }
  0xff   :  { %v199_v35 = vpop.f32.mrf.mxu0  ;;  %v207_v36 = vpop.f32.mrf.mxu1 }
 0x100   :  { %v230_v37 = vadd.f32 %v312_v21, %v219_v34  ;;  %239 = vrot.lane.b32.xlu1 %v233_v32, %s391_s0  ;;  %235 = vrot.lane.b32.xlu0 %v231_v31, %s391_s0  ;;  %v228_v38 = vadd.f32 %v312_v21, %v217_v33 }
 0x102   :  { %v234_v39 = vmax.f32 %v230_v37, 0.0  ;;  %v232_v40 = vmax.f32 %v228_v38, 0.0 }
 0x104   :  { %241 = vrot.lane.b32.xlu1 %v234_v39, %s391_s0  ;;  %247 = vrot.lane.b32.xlu0 %v231_v31, %s392_s2 }
 0x108   :  { %251 = vrot.lane.b32.xlu0 %v233_v32, %s392_s2  ;;  %249 = vrot.lane.b32.xlu1 %v232_v40, %s392_s2 }
 0x10c   :  { %259 = vrot.lane.b32.xlu0 %v231_v31, %s393_s3  ;;  %253 = vrot.lane.b32.xlu1 %v234_v39, %s392_s2 }
 0x110   :  { %261 = vrot.lane.b32.xlu1 %v232_v40, %s393_s3  ;;  %237 = vrot.lane.b32.xlu0 %v232_v40, %s391_s0 }
 0x114   :  { %265 = vrot.lane.b32.xlu1 %v234_v39, %s393_s3  ;;  %263 = vrot.lane.b32.xlu0 %v233_v32, %s393_s3 }
 0x172   :  { %v240_v41 = vpop.permute.xlu1 %239  ;;  %v236_v42 = vpop.permute.xlu0 %235 }
 0x173   :  { %v243_v47 = vadd.f32 %v236_v42, %v231_v31  ;;  %v245_v54 = vadd.f32 %v240_v41, %v233_v32 }
 0x176   :  { %v242_v43 = vpop.permute.xlu1 %241  ;;  %v248_v44 = vpop.permute.xlu0 %247 }
 0x177   :  { %v255_v48 = vadd.f32 %v248_v44, %v243_v47  ;;  %v246_v55 = vadd.f32 %v242_v43, %v234_v39 }
 0x17a   :  { %v252_v45 = vpop.permute.xlu0 %251  ;;  %v250_v46 = vpop.permute.xlu1 %249 }
 0x17b   :  { %v257_v57 = vadd.f32 %v252_v45, %v245_v54 }
 0x17e   :  { %v260_v49 = vpop.permute.xlu0 %259  ;;  %v254_v50 = vpop.permute.xlu1 %253 }
 0x17f   :  { %v267_v51 = vadd.f32 %v260_v49, %v255_v48  ;;  %v258_v58 = vadd.f32 %v254_v50, %v246_v55 }
 0x181   :  { %271 = vst [vmem:[#allocation2] sm:$0xff] %v267_v51 }
 0x182   :  { %v262_v52 = vpop.permute.xlu1 %261  ;;  %v238_v53 = vpop.permute.xlu0 %237 }
 0x183   :  { %v244_v56 = vadd.f32 %v238_v53, %v232_v40 }
 0x185   :  { %v256_v59 = vadd.f32 %v250_v46, %v244_v56 }
 0x186   :  { %v266_v60 = vpop.permute.xlu1 %265  ;;  %v264_v61 = vpop.permute.xlu0 %263 }
 0x187   :  { %v268_v62 = vadd.f32 %v262_v52, %v256_v59  ;;  %v270_v63 = vadd.f32 %v266_v60, %v258_v58  ;;  %v269_v0 = vadd.f32 %v264_v61, %v257_v57 }
 0x189   :  { %272 = vst [vmem:[#allocation2 + $0x8] sm:$0xff] %v268_v62  ;;  %274 = vst [vmem:[#allocation2 + $0x18] sm:$0xff] %v270_v63 }
 0x18a   :  { %273 = vst [vmem:[#allocation2 + $0x10] sm:$0xff] %v269_v0 }
 0x18b   :  { %379 = shalt.err (!%p376_p4)
}
 0x18c   :  { %s395_s5 = smov 128   ;;  %s396_s6 = smov 8  }
 0x18d   :  { %286 = dma.vmem_to_hbm [thread:$0]  %s281_s29, 512, %s517_s4, [#allocation3], %s395_s5, %s395_s5, %s396_s6  }
 0x18e   :  { %388 = dma.done.wait [#allocation3], 512  }
 0x18f   :  { %389 = vsyncadd [#allocation3], 4294966784 }
 0x190   :  { %290 = vsyncpa [#allocation3], 1 }

</bundles_post_ra>
